<compile_context>
chip_gen: v7x
topology: tpu7x:2x2x1
jax: 0.10.0
libtpu: 0.0.40
codegen_flags: <defaults>
</compile_context>

<pallas_src>
import functools

import jax
import jax.numpy as jnp
import numpy as np
from jax import lax
from jax.experimental import pallas as pl
from jax.experimental.pallas import tpu as pltpu


# --------------------------- fused upsample+conv ----------------------------

def _up2x_conv3x3_kernel(x_ref, top_ref, bot_ref, w_ref, b_ref, o_ref, *, tile_h):
    """Fused nearest-2x upsample + 3x3 conv (padding=1) for one H-tile.

    x_ref   : (1, TH, W, Cin)       input-resolution tile
    top_ref : (1, 1,  W, Cin)       row above the tile (clamped; zeroed at image top)
    bot_ref : (1, 1,  W, Cin)       row below the tile (clamped; zeroed at image bottom)
    w_ref   : (2, 2, Cin, 3*Cout)   row-combined weights [row_phase a, row_tap r];
                                    the 3 ORIGINAL column taps are packed on lanes.
    b_ref   : (1, 2*Cout)           bias duplicated for the two column phases
    o_ref   : (1, 2*TH, W, 2*Cout)  output (column phase packed into channels)
    """
    TH = tile_h
    _, _, W, Cin = x_ref.shape
    Cout3 = w_ref.shape[-1]
    Cout = Cout3 // 3
    t = pl.program_id(1)
    nt = pl.num_programs(1)
    cdt = x_ref.dtype

    # Conv zero-padding (in upsampled space) maps to zeroing x row -1 / row H.
    top_scale = jnp.where(t == 0, 0.0, 1.0).astype(cdt)
    bot_scale = jnp.where(t == nt - 1, 0.0, 1.0).astype(cdt)

    x = x_ref[0]                              # (TH, W, Cin)
    top = top_ref[0] * top_scale              # (1,  W, Cin)  = x rows i-1 (first row)
    bot = bot_ref[0] * bot_scale              # (1,  W, Cin)  = x rows i+1 (last row)

    # Row-shifted views of the tile (leading-dim concat only; no lane work).
    if TH > 1:
        x_m1 = jnp.concatenate([top, x[:TH - 1]], axis=0)   # x[i-1, :, :]
        x_p1 = jnp.concatenate([x[1:], bot], axis=0)         # x[i+1, :, :]
    else:
        x_m1, x_p1 = top, bot
    rows = (x_m1.reshape(TH * W, Cin),
            x.reshape(TH * W, Cin),
            x_p1.reshape(TH * W, Cin))

    halves = []
    for a in range(2):                        # output row phase (even / odd rows)
        # u[:, :, c*Cout:(c+1)*Cout] = row-combined partial sum for original
        # column tap c, evaluated at x column j.
        u = jnp.dot(rows[a], w_ref[a, 0], preferred_element_type=jnp.float32)
        u = u + jnp.dot(rows[a + 1], w_ref[a, 1], preferred_element_type=jnp.float32)
        u = u.reshape(TH, W, Cout3)
        u0 = u[:, :, :Cout]                   # column tap dw = -1
        u1 = u[:, :, Cout:2 * Cout]           # column tap dw =  0
        u2 = u[:, :, 2 * Cout:]               # column tap dw = +1
        if W > 1:
            zc = jnp.zeros((TH, 1, Cout), jnp.float32)
            u0s = jnp.concatenate([zc, u0[:, :W - 1, :]], axis=1)   # u0 at col j-1
            u2s = jnp.concatenate([u2[:, 1:, :], zc], axis=1)        # u2 at col j+1
        else:
            u0s = jnp.zeros_like(u0)
            u2s = jnp.zeros_like(u2)
        y_even = u0s + u1 + u2                # output column 2j   (phase b=0)
        y_odd = u0 + u1 + u2s                 # output column 2j+1 (phase b=1)
        halves.append(jnp.concatenate([y_even, y_odd], axis=-1))    # (TH, W, 2*Cout)

    # Interleave the two row phases.  Only leading dims are reshaped (free);
    # the lane-dense (W, 2*Cout) store layout is untouched.
    out = jnp.stack(halves, axis=1).reshape(2 * TH, W, 2 * Cout)
    out = out + b_ref[...].astype(jnp.float32)
    o_ref[0] = out.astype(o_ref.dtype)


def _combine_up2x_conv_weights(w_hwio, bias, compute_dtype):
    """Row-combined, column-tap-packed weights for conv3x3(nearest_up2x(x)).

    wcomb[a, r, ci, c*Cout + co] = wrow[a][r][c, ci, co]  with
      wrow[0] = (w[0],          w[1] + w[2])   # output row phase 0: x rows {i-1, i}
      wrow[1] = (w[0] + w[1],   w[2])          # output row phase 1: x rows {i, i+1}
    c in {0,1,2} is the ORIGINAL kernel column index (combined post-matmul).
    """
    _, _, Cin, Cout = w_hwio.shape
    wf = w_hwio.astype(jnp.float32)
    wrow = ((wf[0], wf[1] + wf[2]),
            (wf[0] + wf[1], wf[2]))
    per_a = []
    for a in range(2):
        per_r = []
        for r in range(2):
            arr = jnp.transpose(wrow[a][r], (1, 0, 2)).reshape(Cin, 3 * Cout)
            per_r.append(arr)
        per_a.append(jnp.stack(per_r, axis=0))                # (2, Cin, 3*Cout)
    wcomb = jnp.stack(per_a, axis=0).astype(compute_dtype)    # (2, 2, Cin, 3*Cout)
    bias2 = jnp.concatenate([bias, bias]).reshape(1, 2 * Cout).astype(jnp.float32)
    return wcomb, bias2


def _divisors_desc(n):
    return [d for d in range(n, 0, -1) if n % d == 0]


def _pick_tile_h(H, W, cin, cout, in_bytes, out_bytes, budget=10 * 2**20):
    """Largest divisor of H whose per-step working set fits a conservative
    VMEM budget (safe on v7x's 64 MiB with double buffering)."""
    for th in _divisors_desc(H):
        inp = 2 * th * W * cin * in_bytes + 4 * W * cin * in_bytes   # tiles + halos (x2 buf)
        tmp_in = 2 * th * W * cin * in_bytes                          # row-shifted views
        outp = 8 * th * W * cout * out_bytes                          # output tiles (x2 buf)
        wts = 2 * 12 * cin * cout * in_bytes * 2                      # combined weights
        tmp_f32 = 40 * th * W * cout * 4                              # u / shifts / halves
        if inp + tmp_in + outp + wts + tmp_f32 <= budget:
            return th
    return 1


def upsample2x_conv3x3_nhwc(x, w_hwio, bias, *, tile_h=None,
                            compute_dtype=jnp.bfloat16, out_dtype=None,
                            vmem_limit_bytes=48 * 1024 * 1024):
    """out = conv3x3(nearest_up2x(x)) for NHWC x, HWIO weights."""
    N, H, W, Cin = x.shape
    kh, kw, wcin, Cout = w_hwio.shape
    assert (kh, kw) == (3, 3) and wcin == Cin
    out_dtype = out_dtype or x.dtype
    in_b = jnp.dtype(compute_dtype).itemsize
    out_b = jnp.dtype(out_dtype).itemsize
    if tile_h is None:
        tile_h = _pick_tile_h(H, W, Cin, Cout, in_b, out_b)
    assert H % tile_h == 0, (H, tile_h)
    nt = H // tile_h

    wcomb, bias2 = _combine_up2x_conv_weights(w_hwio, bias, compute_dtype)
    xk = x.astype(compute_dtype)

    out = pl.pallas_call(
        functools.partial(_up2x_conv3x3_kernel, tile_h=tile_h),
        out_shape=jax.ShapeDtypeStruct((N, 2 * H, W, 2 * Cout), out_dtype),
        grid=(N, nt),
        in_specs=[
            # main input tile
            pl.BlockSpec((1, tile_h, W, Cin), lambda n, t: (n, t, 0, 0)),
            # 1-row halo above / below (clamped at the image boundary; the
            # kernel zeroes it there) -- no host-side jnp.pad.
            pl.BlockSpec((1, 1, W, Cin),
                         lambda n, t: (n, jnp.maximum(t * tile_h - 1, 0), 0, 0)),
            pl.BlockSpec((1, 1, W, Cin),
                         lambda n, t: (n, jnp.minimum((t + 1) * tile_h, H - 1),
                                       0, 0)),
            # combined weights + bias: constant index_map -> VMEM resident.
            pl.BlockSpec((2, 2, Cin, 3 * Cout), lambda n, t: (0, 0, 0, 0)),
            pl.BlockSpec((1, 2 * Cout), lambda n, t: (0, 0)),
        ],
        out_specs=pl.BlockSpec((1, 2 * tile_h, W, 2 * Cout),
                               lambda n, t: (n, t, 0, 0)),
        compiler_params=pltpu.CompilerParams(
            dimension_semantics=("parallel", "parallel"),
            vmem_limit_bytes=vmem_limit_bytes),
    )(xk, xk, xk, wcomb, bias2)
    # Free metadata reshape: unpack the column phase from the channel dim.
    return out.reshape(N, 2 * H, 2 * W, Cout)


# --------------------------- upsample-only kernel ---------------------------

def _up2x_nearest_kernel(x_ref, o_ref):
    _, TH, W, C = x_ref.shape
    x = x_ref[0]                                    # (TH, W, C)
    xc = jnp.concatenate([x, x], axis=-1)           # column phases -> lanes
    o_ref[0] = jnp.stack([xc, xc], axis=1).reshape(2 * TH, W, 2 * C)


def upsample2x_nearest_nhwc(x, *, tile_h=None,
                            vmem_limit_bytes=48 * 1024 * 1024):
    N, H, W, C = x.shape
    eb = jnp.dtype(x.dtype).itemsize
    if tile_h is None:
        budget = 10 * 2**20
        tile_h = next((th for th in _divisors_desc(H)
                       if 12 * th * W * C * eb <= budget), 1)
    assert H % tile_h == 0
    nt = H // tile_h
    out = pl.pallas_call(
        _up2x_nearest_kernel,
        out_shape=jax.ShapeDtypeStruct((N, 2 * H, W, 2 * C), x.dtype),
        grid=(N, nt),
        in_specs=[pl.BlockSpec((1, tile_h, W, C), lambda n, t: (n, t, 0, 0))],
        out_specs=pl.BlockSpec((1, 2 * tile_h, W, 2 * C),
                               lambda n, t: (n, t, 0, 0)),
        compiler_params=pltpu.CompilerParams(
            dimension_semantics=("parallel", "parallel"),
            vmem_limit_bytes=vmem_limit_bytes),
    )(x)
    return out.reshape(N, 2 * H, 2 * W, C)


# ------------------------------- full forward -------------------------------

def upsample2d_forward(x_nchw, *, use_conv=False, weight_oihw=None, bias=None,
                       interpolate=True, compute_dtype=jnp.bfloat16,
                       tile_h=None):
    """Upsample2D.forward for the default config (norm_type=None,
    use_conv_transpose=False, scale_factor=2.0, output_size=None).

    # TODO(synk): use_conv_transpose (ConvTranspose2d), norm_type='ln_norm'/
    # 'rms_norm', output_size-driven resize and the interpolate=False+conv
    # path are not implemented in Pallas.
    """
    if not interpolate:
        raise NotImplementedError("interpolate=False path not implemented")
    x = jnp.transpose(x_nchw, (0, 2, 3, 1))                    # NCHW -> NHWC glue
    if use_conv:
        w_hwio = jnp.transpose(weight_oihw, (2, 3, 1, 0))      # OIHW -> HWIO
        y = upsample2x_conv3x3_nhwc(x, w_hwio, bias,
                                    compute_dtype=compute_dtype, tile_h=tile_h)
    else:
        y = upsample2x_nearest_nhwc(x, tile_h=tile_h)
    return jnp.transpose(y, (0, 3, 1, 2))                      # back to NCHW


# ------------------------------ JAX reference --------------------------------

def ref_upsample2d(x_nchw, *, use_conv=False, weight_oihw=None, bias=None,
                   cast_dtype=None):
    up = jnp.repeat(jnp.repeat(x_nchw, 2, axis=2), 2, axis=3)  # nearest 2x
    if not use_conv:
        return up
    if cast_dtype is not None:
        up = up.astype(cast_dtype).astype(jnp.float32)
        w = weight_oihw.astype(cast_dtype).astype(jnp.float32)
    else:
        w = weight_oihw
    y = lax.conv_general_dilated(
        up, w, window_strides=(1, 1), padding=((1, 1), (1, 1)),
        dimension_numbers=("NCHW", "OIHW", "NCHW"),
        precision=lax.Precision.HIGHEST)
    return y + bias.reshape(1, -1, 1, 1)


# ----------------------------------- main ------------------------------------

if __name__ == "__main__":
    key = jax.random.PRNGKey(0)
    kx, kw, kb, kx2, kw2, kb2 = jax.random.split(key, 6)

    # Small shape: batch=2, channels=4, 16x16 spatial.
    N, C, H, W = 2, 4, 16, 16
    x = jax.random.normal(kx, (N, C, H, W), jnp.float32)            # NCHW
    w = 0.05 * jax.random.normal(kw, (C, C, 3, 3), jnp.float32)     # OIHW
    b = 0.05 * jax.random.normal(kb, (C,), jnp.float32)

    # use_conv=False (module default): pure nearest 2x upsample, exact.
    out_up = jax.block_until_ready(upsample2d_forward(x, use_conv=False, tile_h=8))
    ref_up = jax.block_until_ready(ref_upsample2d(x, use_conv=False))
    np.testing.assert_allclose(np.asarray(out_up), np.asarray(ref_up),
                               rtol=0, atol=0)

    # use_conv=True, f32 compute: 4 H-tiles exercise halo / phase interleave.
    out_f32 = jax.block_until_ready(
        upsample2d_forward(x, use_conv=True, weight_oihw=w, bias=b,
                           compute_dtype=jnp.float32, tile_h=4))
    ref_f32 = jax.block_until_ready(
        ref_upsample2d(x, use_conv=True, weight_oihw=w, bias=b))
    np.testing.assert_allclose(np.asarray(out_f32), np.asarray(ref_f32),
                               rtol=1e-2, atol=1e-2)

    # use_conv=True, MXU-aligned channels, bf16 compute (default perf path):
    # compare vs a bf16-cast reference (residual = weight-combination rounding).
    C2 = 128
    x2 = jax.random.normal(kx2, (1, C2, H, W), jnp.float32)
    w2 = 0.05 * jax.random.normal(kw2, (C2, C2, 3, 3), jnp.float32)
    b2 = 0.05 * jax.random.normal(kb2, (C2,), jnp.float32)
    out_bf16 = jax.block_until_ready(
        upsample2d_forward(x2, use_conv=True, weight_oihw=w2, bias=b2,
                           compute_dtype=jnp.bfloat16, tile_h=4))
    ref_bf16 = jax.block_until_ready(
        ref_upsample2d(x2, use_conv=True, weight_oihw=w2, bias=b2,
                       cast_dtype=jnp.bfloat16))
    np.testing.assert_allclose(np.asarray(out_bf16), np.asarray(ref_bf16),
                               rtol=2e-2, atol=5e-2)

    print("KERNEL_OK")
</pallas_src>

<mosaic_0001>
module attributes {stable_mosaic.version = 11 : i64} {
  func.func @_up2x_nearest_kernel(%arg0: i32, %arg1: i32, %arg2: memref<1x8x16x4xf32, #tpu.memory_space<vmem>>, %arg3: memref<1x16x16x8xf32, #tpu.memory_space<vmem>>) attributes {dimension_semantics = [#tpu.dimension_semantics<parallel>, #tpu.dimension_semantics<parallel>], iteration_bounds = array<i64: 2, 2>, scalar_prefetch = 0 : i64, scratch_operands = 0 : i64, tpu.core_type = #tpu.core_type<tc>, window_params = [{transform_indices = @transform_0, window_bounds = array<i64: 1, 8, 16, 4>}, {transform_indices = @transform_1, window_bounds = array<i64: 1, 16, 16, 8>}]} {
    %c0 = arith.constant 0 : index
    %c0_0 = arith.constant 0 : index
    %c0_1 = arith.constant 0 : index
    %c0_2 = arith.constant 0 : index
    %0 = vector.load %arg2[%c0, %c0_0, %c0_1, %c0_2] : memref<1x8x16x4xf32, #tpu.memory_space<vmem>>, vector<1x8x16x4xf32>
    %1 = vector.shape_cast %0 : vector<1x8x16x4xf32> to vector<8x16x4xf32>
    %2 = tpu.concatenate %1, %1 in 2 : vector<8x16x4xf32>, vector<8x16x4xf32> -> vector<8x16x8xf32>
    %3 = vector.shape_cast %2 : vector<8x16x8xf32> to vector<8x1x16x8xf32>
    %4 = vector.shape_cast %2 : vector<8x16x8xf32> to vector<8x1x16x8xf32>
    %5 = tpu.concatenate %3, %4 in 1 : vector<8x1x16x8xf32>, vector<8x1x16x8xf32> -> vector<8x2x16x8xf32>
    %6 = vector.shape_cast %5 : vector<8x2x16x8xf32> to vector<16x16x8xf32>
    %c0_3 = arith.constant 0 : index
    %c0_4 = arith.constant 0 : index
    %c0_5 = arith.constant 0 : index
    %c0_6 = arith.constant 0 : index
    %7 = vector.load %arg3[%c0_3, %c0_4, %c0_5, %c0_6] : memref<1x16x16x8xf32, #tpu.memory_space<vmem>>, vector<1x16x16x8xf32>
    %8 = vector.shape_cast %7 : vector<1x16x16x8xf32> to vector<16x16x8xf32>
    %9 = vector.shape_cast %6 : vector<16x16x8xf32> to vector<1x16x16x8xf32>
    tpu.vector_store %arg3[%c0_3, %c0_4, %c0_5, %c0_6], %9 {strides = array<i32>} : memref<1x16x16x8xf32, #tpu.memory_space<vmem>>, vector<1x16x16x8xf32>,
    return
  }
  func.func @transform_0(%arg0: i32, %arg1: i32) -> (i32, i32, i32, i32) {
    %c0_i32 = arith.constant 0 : i32
    %c0_i32_0 = arith.constant 0 : i32
    %c0_i32_1 = arith.constant 0 : i32
    return %arg0, %arg1, %c0_i32, %c0_i32_0 : i32, i32, i32, i32
  }
  func.func @transform_1(%arg0: i32, %arg1: i32) -> (i32, i32, i32, i32) {
    %c0_i32 = arith.constant 0 : i32
    %c0_i32_0 = arith.constant 0 : i32
    %c0_i32_1 = arith.constant 0 : i32
    return %arg0, %arg1, %c0_i32, %c0_i32_0 : i32, i32, i32, i32
  }
}

</mosaic_0001>

<bundles_post_ra>
// kernel: tpu_custom_call.1
= control target key start
LH: loop header
LB: loop body
LE: loop exit
PB: predicated region body
PF: predicated region fallthrough
CT: control target
= control target key end

     0   :  { %s497_s6 = smov 0   ;;  %s499_s7 = smov 0   ;;  %s680_s0 = inlined_call_operand.vmem [shape: f32[2,16,16,4], index: 0, kind: input, shape index: {}]   ;;  %s681_s1 = inlined_call_operand.vmem [shape: f32[2,32,16,8], index: 1, kind: output, shape index: {}]  }
   0x1   :  { %s501_s8 = smov 0   ;;  %s503_s9 = smov 0  }
   0x2   :  { %s505_s10 = smov 0  }
   0x3 LB: > { %s20_s11 = sadd.s32 1, %s476_s8  ;;  %s23_s12 = sadd.s32 1, %s480_s9  ;;  %s484_s10 = sphi %s505_s10, %s11_s10   ;;  %s480_s9 = sphi %s503_s9, %s685_s9   ;;  %s476_s8 = sphi %s501_s8, %s684_s8   ;;  %s472_s7 = sphi %s499_s7, %s683_s7   ;;  %s468_s6 = sphi %s497_s6, %s682_s6  }
   0x4   : > { %p21_p0 = scmp.ge.s32.totalorder %s20_s11, 2  ;;  %p394_p1 = scmp.ge.s32.totalorder %s484_s10, 1 }
   0x5   : > { %p109_p2 = scmp.lt.s32.totalorder %s484_s10, 5 }
   0x6   : > { %s687_s11 = smov (%p21_p0, %s20_s11), 0  ;;  %s689_s12 = smov (!%p21_p0, %s23_s12), %s480_s9 }
   0x7   : > { %p110_p3 = pnand %p394_p1, %p109_p2  ;;  %p25_p4 = scmp.ge.s32.totalorder %s689_s12, 2 }
   0x8   : > { %s395_s13 = sshll.u32 (!%p110_p3), %s468_s6, 3  ;;  %p140_p5 = scmp.lt.s32.totalorder (!%p110_p3), %s472_s7, 1  ;;  %vm241_vm0 = vcmask (!%p110_p3), 31744   ;;  %vm258_vm1 = vcmask (!%p110_p3), 64512  }
   0x9   : > { %s691_s12 = smov (%p25_p4, %s689_s12), 0  ;;  %113 = sbr.rel (%p110_p3) target bundleno = 168 (0xa8), region = 24 }
   0xa   : > { %p142_p6 = scmp.lt.s32.totalorder (!%p110_p3), %s395_s13, 15  ;;  %s486_s21 = smov (!%p110_p3), 4  }
   0xb   : > { %s399_s22 = sshll.u32 (!%p110_p3), %s468_s6, 4 }
   0xc   : > { %p153_p7 = scmp.lt.s32.totalorder (!%p110_p3), %s399_s22, 31 }
  0x10   : > { %s693_s7 = smov (!%p140_p5, %s472_s7), 1  ;;  %s695_s13 = smov (!%p142_p6, %s395_s13), 15 }
  0x11   : > { %s397_s14 = sshll.u32 %s693_s7, 5  ;;  %s396_s15 = sshll.u32 %s695_s13, 1 }
  0x12   : > { %s146_s16 = sadd.s32 %s397_s14, %s396_s15  ;;  %s697_s22 = smov (!%p153_p7, %s399_s22), 31 }
  0x13   : > { %s398_s17 = sshll.u32 %s146_s16, 3  ;;  %s400_s23 = sshll.u32 %s697_s22, 1 }
  0x14   : > { %s536_s20 = scalar_lea.vmem %s680_s0, %s398_s17  ;;  %s401_s24 = sshll.u32 %s693_s7, 6 }
  0x15   : > { %v163_v0 = vld [vmem:[%s536_s20 + $0x10] sm:$0xff]  ;;  %v161_v1 = vld [vmem:[%s536_s20] sm:$0xff]  ;;  %v164_v2 = vld [vmem:[%s536_s20 + $0x18] sm:$0xff]  ;;  %s157_s25 = sadd.s32 %s401_s24, %s400_s23 }
  0x16   : > { %197 = vrot.lane.b32.xlu1 %v163_v0, %s486_s21  ;;  %193 = vrot.lane.b32.xlu0 %v161_v1, %s486_s21  ;;  %v162_v3 = vld [vmem:[%s536_s20 + $0x8] sm:$0xff]  ;;  %v165_v5 = vld [vmem:[%s536_s20 + $0x20] sm:$0xff]  ;;  %s402_s26 = sshll.u32 %s157_s25, 3 }
  0x17   : > { %v166_v4 = vld [vmem:[%s536_s20 + $0x28] sm:$0xff]  ;;  %v168_v6 = vld [vmem:[%s536_s20 + $0x38] sm:$0xff]  ;;  %v167_v7 = vld [vmem:[%s536_s20 + $0x30] sm:$0xff]  ;;  %s577_s29 = scalar_lea.vmem %s681_s1, %s402_s26 }
  0x18   : > { %v170_v8 = vld [vmem:[%s536_s20 + $0x48] sm:$0xff]  ;;  %v169_v9 = vld [vmem:[%s536_s20 + $0x40] sm:$0xff]  ;;  %v549_v10 = vld [vmem:[%s536_s20 + $0x58] sm:$0xff] }
  0x19   : > { %v552_v11 = vld [vmem:[%s536_s20 + $0x50] sm:$0xff]  ;;  %v557_v12 = vld [vmem:[%s536_s20 + $0x68] sm:$0xff]  ;;  %v560_v13 = vld [vmem:[%s536_s20 + $0x60] sm:$0xff] }
  0x1a   : > { %199 = vrot.lane.b32.xlu1 %v164_v2, %s486_s21  ;;  %195 = vrot.lane.b32.xlu0 %v162_v3, %s486_s21  ;;  %v565_v14 = vld [vmem:[%s536_s20 + $0x78] sm:$0xff]  ;;  %v568_v15 = vld [vmem:[%s536_s20 + $0x70] sm:$0xff] }
  0x1e   : > { %203 = vrot.lane.b32.xlu1 %v166_v4, %s486_s21  ;;  %201 = vrot.lane.b32.xlu0 %v165_v5, %s486_s21 }
  0x22   : > { %207 = vrot.lane.b32.xlu1 %v168_v6, %s486_s21  ;;  %205 = vrot.lane.b32.xlu0 %v167_v7, %s486_s21 }
  0x26   : > { %211 = vrot.lane.b32.xlu1 %v170_v8, %s486_s21  ;;  %209 = vrot.lane.b32.xlu0 %v169_v9, %s486_s21 }
  0x2a   : > { %215 = vrot.lane.b32.xlu1 %v549_v10, %s486_s21  ;;  %213 = vrot.lane.b32.xlu0 %v552_v11, %s486_s21 }
  0x2e   : > { %219 = vrot.lane.b32.xlu1 %v557_v12, %s486_s21  ;;  %217 = vrot.lane.b32.xlu0 %v560_v13, %s486_s21 }
  0x32   : > { %223 = vrot.lane.b32.xlu1 %v565_v14, %s486_s21  ;;  %221 = vrot.lane.b32.xlu0 %v568_v15, %s486_s21 }
  0x88   : > { %v198_v16 = vpop.permute.xlu1 %197  ;;  %v194_v17 = vpop.permute.xlu0 %193 }
  0x89   : > { %v244_v18 = vsel %vm241_vm0, %v163_v0, %v198_v16  ;;  %v242_v19 = vsel %vm241_vm0, %v161_v1, %v194_v17 }
  0x8a   : > { %263 = vst.msk [vmem:[%s577_s29 + $0x20] sm:$0xff] %vm258_vm1, %v244_v18  ;;  %265 = vst.msk [vmem:[%s577_s29 + $0x30] sm:$0xff] %vm258_vm1, %v244_v18 }
  0x8b   : > { %259 = vst.msk [vmem:[%s577_s29] sm:$0xff] %vm258_vm1, %v242_v19  ;;  %261 = vst.msk [vmem:[%s577_s29 + $0x10] sm:$0xff] %vm258_vm1, %v242_v19 }
  0x8c   : > { %v200_v20 = vpop.permute.xlu1 %199  ;;  %v196_v21 = vpop.permute.xlu0 %195 }
  0x8d   : > { %v245_v22 = vsel %vm241_vm0, %v164_v2, %v200_v20  ;;  %v243_v23 = vsel %vm241_vm0, %v162_v3, %v196_v21 }
  0x8e   : > { %264 = vst.msk [vmem:[%s577_s29 + $0x28] sm:$0xff] %vm258_vm1, %v245_v22  ;;  %266 = vst.msk [vmem:[%s577_s29 + $0x38] sm:$0xff] %vm258_vm1, %v245_v22 }
  0x8f   : > { %260 = vst.msk [vmem:[%s577_s29 + $0x8] sm:$0xff] %vm258_vm1, %v243_v23  ;;  %262 = vst.msk [vmem:[%s577_s29 + $0x18] sm:$0xff] %vm258_vm1, %v243_v23 }
  0x90   : > { %v204_v24 = vpop.permute.xlu1 %203  ;;  %v202_v25 = vpop.permute.xlu0 %201 }
  0x91   : > { %v247_v26 = vsel %vm241_vm0, %v166_v4, %v204_v24  ;;  %v246_v27 = vsel %vm241_vm0, %v165_v5, %v202_v25 }
  0x92   : > { %268 = vst.msk [vmem:[%s577_s29 + $0x48] sm:$0xff] %vm258_vm1, %v247_v26  ;;  %270 = vst.msk [vmem:[%s577_s29 + $0x58] sm:$0xff] %vm258_vm1, %v247_v26 }
  0x93   : > { %267 = vst.msk [vmem:[%s577_s29 + $0x40] sm:$0xff] %vm258_vm1, %v246_v27  ;;  %269 = vst.msk [vmem:[%s577_s29 + $0x50] sm:$0xff] %vm258_vm1, %v246_v27 }
  0x94   : > { %v208_v28 = vpop.permute.xlu1 %207  ;;  %v206_v29 = vpop.permute.xlu0 %205 }
  0x95   : > { %v249_v30 = vsel %vm241_vm0, %v168_v6, %v208_v28  ;;  %v248_v31 = vsel %vm241_vm0, %v167_v7, %v206_v29 }
  0x96   : > { %272 = vst.msk [vmem:[%s577_s29 + $0x68] sm:$0xff] %vm258_vm1, %v249_v30  ;;  %274 = vst.msk [vmem:[%s577_s29 + $0x78] sm:$0xff] %vm258_vm1, %v249_v30 }
  0x97   : > { %271 = vst.msk [vmem:[%s577_s29 + $0x60] sm:$0xff] %vm258_vm1, %v248_v31  ;;  %273 = vst.msk [vmem:[%s577_s29 + $0x70] sm:$0xff] %vm258_vm1, %v248_v31 }
  0x98   : > { %v212_v32 = vpop.permute.xlu1 %211  ;;  %v210_v33 = vpop.permute.xlu0 %209 }
  0x99   : > { %v251_v34 = vsel %vm241_vm0, %v170_v8, %v212_v32  ;;  %v250_v35 = vsel %vm241_vm0, %v169_v9, %v210_v33 }
  0x9a   : > { %276 = vst.msk [vmem:[%s577_s29 + $0x88] sm:$0xff] %vm258_vm1, %v251_v34  ;;  %278 = vst.msk [vmem:[%s577_s29 + $0x98] sm:$0xff] %vm258_vm1, %v251_v34 }
  0x9b   : > { %275 = vst.msk [vmem:[%s577_s29 + $0x80] sm:$0xff] %vm258_vm1, %v250_v35  ;;  %277 = vst.msk [vmem:[%s577_s29 + $0x90] sm:$0xff] %vm258_vm1, %v250_v35 }
  0x9c   : > { %v216_v36 = vpop.permute.xlu1 %215  ;;  %v214_v37 = vpop.permute.xlu0 %213 }
  0x9d   : > { %v253_v38 = vsel %vm241_vm0, %v549_v10, %v216_v36  ;;  %v252_v39 = vsel %vm241_vm0, %v552_v11, %v214_v37 }
  0x9e   : > { %280 = vst.msk [vmem:[%s577_s29 + $0xa8] sm:$0xff] %vm258_vm1, %v253_v38  ;;  %282 = vst.msk [vmem:[%s577_s29 + $0xb8] sm:$0xff] %vm258_vm1, %v253_v38 }
  0x9f   : > { %279 = vst.msk [vmem:[%s577_s29 + $0xa0] sm:$0xff] %vm258_vm1, %v252_v39  ;;  %281 = vst.msk [vmem:[%s577_s29 + $0xb0] sm:$0xff] %vm258_vm1, %v252_v39 }
  0xa0   : > { %v220_v40 = vpop.permute.xlu1 %219  ;;  %v218_v41 = vpop.permute.xlu0 %217 }
  0xa1   : > { %v255_v42 = vsel %vm241_vm0, %v557_v12, %v220_v40  ;;  %v254_v43 = vsel %vm241_vm0, %v560_v13, %v218_v41 }
  0xa2   : > { %284 = vst.msk [vmem:[%s577_s29 + $0xc8] sm:$0xff] %vm258_vm1, %v255_v42  ;;  %286 = vst.msk [vmem:[%s577_s29 + $0xd8] sm:$0xff] %vm258_vm1, %v255_v42 }
  0xa3   : > { %283 = vst.msk [vmem:[%s577_s29 + $0xc0] sm:$0xff] %vm258_vm1, %v254_v43  ;;  %285 = vst.msk [vmem:[%s577_s29 + $0xd0] sm:$0xff] %vm258_vm1, %v254_v43 }
  0xa4   : > { %v224_v44 = vpop.permute.xlu1 %223  ;;  %v222_v45 = vpop.permute.xlu0 %221 }
  0xa5   : > { %v257_v46 = vsel %vm241_vm0, %v565_v14, %v224_v44  ;;  %v256_v47 = vsel %vm241_vm0, %v568_v15, %v222_v45 }
  0xa6   : > { %288 = vst.msk [vmem:[%s577_s29 + $0xe8] sm:$0xff] %vm258_vm1, %v257_v46  ;;  %290 = vst.msk [vmem:[%s577_s29 + $0xf8] sm:$0xff] %vm258_vm1, %v257_v46 }
  0xa7   : > { %287 = vst.msk [vmem:[%s577_s29 + $0xe0] sm:$0xff] %vm258_vm1, %v256_v47  ;;  %289 = vst.msk [vmem:[%s577_s29 + $0xf0] sm:$0xff] %vm258_vm1, %v256_v47 }
  0xa8 PF: > { %s11_s10 = sadd.s32 1, %s484_s10   ;;  %s682_s6 = smov %s476_s8 }
  0xa9   : > { %p8_p8 = scmp.ge.s32.totalorder %s11_s10, 6   ;;  %s683_s7 = smov %s480_s9 }
  0xaa   : > { %s684_s8 = smov %s687_s11  ;;  %s685_s9 = smov %s691_s12 }
  0xab   :  { %10 = sbr.rel (!%p8_p8) target bundleno = 3 (0x3), region = 54 }

</bundles_post_ra>
